<compile_context>
chip_gen: v7x
topology: tpu7x:2x2x1
jax: 0.10.0
libtpu: 0.0.40
codegen_flags: <defaults>
</compile_context>

<pallas_src>
import functools

import jax
import jax.numpy as jnp
from jax.experimental import pallas as pl
from jax.experimental.pallas import tpu as pltpu


def unet_down_kernel(a0_ref, a1_ref, w_ref, o_ref, *, Wo):
    """One (batch element, C_out tile) grid step.

    a0_ref, a1_ref : ((Ho+1)*Wo, 4*C_in) bf16 -- space-to-depth input rows,
                     column windows dc=0 / dc=1, flattened over (row, col).
    w_ref          : (2, 2, 4*C_in, C_TILE) bf16 -- conv weights regrouped so
                     the stride-2 4x4 conv is 4 accumulated matmuls.
    o_ref          : (Ho*Wo, C_TILE) -- InstanceNorm + LeakyReLU output.
    """
    P, c_tile = o_ref.shape
    acc = jnp.zeros((P, c_tile), jnp.float32)

    # Conv2d(k=4, s=2, p=1) == sum over the 2x2 window shifts (dr, dc) of
    # (P x 4C_in) @ (4C_in x C_TILE) MXU matmuls.  Bias is omitted: it is a
    # per-channel constant and cancels in the InstanceNorm mean subtraction.
    for dr in range(2):
        for dc in range(2):
            lhs_ref = a0_ref if dc == 0 else a1_ref
            lhs = lhs_ref[pl.ds(dr * Wo, P), :]
            acc += jnp.dot(lhs, w_ref[dr, dc],
                           preferred_element_type=jnp.float32)

    # InstanceNorm2d (affine=False, eps=1e-5): per-channel over the P spatial
    # positions, biased variance, one-pass moments in f32.
    inv_p = 1.0 / P
    s1 = jnp.sum(acc, axis=0, keepdims=True)            # (1, C_TILE)
    s2 = jnp.sum(acc * acc, axis=0, keepdims=True)       # (1, C_TILE)
    mean = s1 * inv_p
    var = jnp.maximum(s2 * inv_p - mean * mean, 0.0)      # guard cancellation
    yn = (acc - mean) * jax.lax.rsqrt(var + 1e-5)

    # LeakyReLU(0.2)
    o_ref[...] = jnp.where(yn >= 0, yn, 0.2 * yn).astype(o_ref.dtype)


def unet_down(x, weight, bias=None, *, channels_last_out=False):
    """x: (N, C_in, H, W); weight: (C_out, C_in, 4, 4); bias: (C_out,) (ignored:
    it cancels under InstanceNorm(affine=False))."""
    del bias  # per-channel bias before InstanceNorm is a mathematical no-op.

    N, C_in, H, W = x.shape
    C_out = weight.shape[0]
    assert H % 2 == 0 and W % 2 == 0, "UNetDown expects even spatial dims"
    Ho, Wo = H // 2, W // 2
    P = Ho * Wo
    K = 4 * C_in                       # space-to-depth feature size (rp, cp, c)
    C_TILE = 128
    C_pad = ((C_out + C_TILE - 1) // C_TILE) * C_TILE

    # ---- cheap XLA-side layout prep (≈1 pass over x, no 4x im2col blowup) ----
    # NHWC + conv padding=1.
    xh = jnp.transpose(x, (0, 2, 3, 1))
    xp = jnp.pad(xh, ((0, 0), (1, 1), (1, 1), (0, 0)))
    # 2x2 space-to-depth: s2d[n, i, j, (rp, cp, c)] = xp[n, 2i+rp, 2j+cp, c].
    s2d = xp.reshape(N, Ho + 1, 2, Wo + 1, 2, C_in)
    s2d = jnp.transpose(s2d, (0, 1, 3, 2, 4, 5)).reshape(N, Ho + 1, Wo + 1, K)
    # Two column windows (dc = 0, 1), flattened over (Ho+1, Wo); bf16 for MXU.
    P1 = (Ho + 1) * Wo
    a0 = s2d[:, :, 0:Wo, :].reshape(N, P1, K).astype(jnp.bfloat16)
    a1 = s2d[:, :, 1:Wo + 1, :].reshape(N, P1, K).astype(jnp.bfloat16)

    # Weights -> (dr, dc, (rp, cp, c), co), C_out zero-padded to 128 lanes.
    wd = weight.reshape(C_out, C_in, 2, 2, 2, 2)          # (co, c, dr, rp, dc, cp)
    wd = jnp.transpose(wd, (2, 4, 3, 5, 1, 0))            # (dr, dc, rp, cp, c, co)
    wd = wd.reshape(2, 2, K, C_out)
    wd = jnp.pad(wd, ((0, 0), (0, 0), (0, 0), (0, C_pad - C_out)))
    wd = wd.astype(jnp.bfloat16)

    # ---- VMEM budget (double-buffered blocks + f32 accumulator) ----
    blk_bytes = (
        2 * (2 * P1 * K * 2)              # a0 + a1 blocks (bf16)
        + 2 * (2 * 2 * K * C_TILE * 2)    # weight block (bf16)
        + 2 * (P * C_TILE * 4)            # output block (f32)
        + P * C_TILE * 4                  # accumulator
    )
    vmem_limit = int(min(max(2 * blk_bytes, 32 * 1024 * 1024), 48 * 1024 * 1024))

    kernel = functools.partial(unet_down_kernel, Wo=Wo)
    out = pl.pallas_call(
        kernel,
        out_shape=jax.ShapeDtypeStruct((N, P, C_pad), x.dtype),
        grid_spec=pltpu.PrefetchScalarGridSpec(
            num_scalar_prefetch=0,
            grid=(N, C_pad // C_TILE),
            in_specs=[
                # Input blocks are constant along the c axis -> fetched once
                # per batch element (c is the inner grid axis).
                pl.BlockSpec((None, P1, K), lambda n, c: (n, 0, 0)),
                pl.BlockSpec((None, P1, K), lambda n, c: (n, 0, 0)),
                pl.BlockSpec((2, 2, K, C_TILE), lambda n, c: (0, 0, 0, c)),
            ],
            out_specs=pl.BlockSpec((None, P, C_TILE), lambda n, c: (n, 0, c)),
        ),
        compiler_params=pltpu.CompilerParams(
            dimension_semantics=("parallel", "parallel"),
            vmem_limit_bytes=vmem_limit,
        ),
    )(a0, a1, wd)

    out = out[:, :, :C_out].reshape(N, Ho, Wo, C_out)      # NHWC
    if channels_last_out:
        return out                                          # skip NCHW transpose
    return jnp.transpose(out, (0, 3, 1, 2))                 # NCHW (PyTorch layout)


def _reference(x, weight, bias):
    y = jax.lax.conv_general_dilated(
        x, weight, window_strides=(2, 2), padding=((1, 1), (1, 1)),
        dimension_numbers=("NCHW", "OIHW", "NCHW"))
    y = y + bias.reshape(1, -1, 1, 1)
    mean = y.mean(axis=(2, 3), keepdims=True)
    var = ((y - mean) ** 2).mean(axis=(2, 3), keepdims=True)
    yn = (y - mean) / jnp.sqrt(var + 1e-5)
    return jnp.where(yn >= 0, yn, 0.2 * yn)


if __name__ == "__main__":
    N, C_in, C_out, H, W = 2, 4, 8, 16, 16

    key = jax.random.PRNGKey(0)
    kx, kw, kb = jax.random.split(key, 3)

    x = jax.random.normal(kx, (N, C_in, H, W), dtype=jnp.float32)
    # PyTorch Conv2d default init scale: U(-k, k), k = 1/sqrt(C_in*4*4)
    fan_in = C_in * 4 * 4
    bound = 1.0 / (fan_in ** 0.5)
    weight = jax.random.uniform(kw, (C_out, C_in, 4, 4), jnp.float32, -bound, bound)
    bias = jax.random.uniform(kb, (C_out,), jnp.float32, -bound, bound)

    out = jax.block_until_ready(unet_down(x, weight, bias))
    ref = jax.block_until_ready(_reference(x, weight, bias))

    assert out.shape == (N, C_out, H // 2, W // 2), out.shape
    # Slightly looser than pure-f32 tolerance because matmul operands are bf16.
    err = float(jnp.abs(out - ref).max())
    assert jnp.allclose(out, ref, rtol=3e-2, atol=3e-2), err

    print("KERNEL_OK")
</pallas_src>

<mosaic_0001>
module attributes {stable_mosaic.version = 11 : i64} {
  func.func @unet_down_kernel(%arg0: i32, %arg1: i32, %arg2: memref<1x72x16xbf16, #tpu.memory_space<vmem>>, %arg3: memref<1x72x16xbf16, #tpu.memory_space<vmem>>, %arg4: memref<2x2x16x128xbf16, #tpu.memory_space<vmem>>, %arg5: memref<1x64x128xf32, #tpu.memory_space<vmem>>) attributes {dimension_semantics = [#tpu.dimension_semantics<parallel>, #tpu.dimension_semantics<parallel>], iteration_bounds = array<i64: 2, 1>, scalar_prefetch = 0 : i64, scratch_operands = 0 : i64, tpu.core_type = #tpu.core_type<tc>, window_params = [{transform_indices = @transform_0, window_bounds = array<i64: 1, 72, 16>}, {transform_indices = @transform_1, window_bounds = array<i64: 1, 72, 16>}, {transform_indices = @transform_2, window_bounds = array<i64: 2, 2, 16, 128>}, {transform_indices = @transform_3, window_bounds = array<i64: 1, 64, 128>}]} {
    %cst = arith.constant 0.000000e+00 : f32
    %0 = vector.broadcast %cst : f32 to vector<64x128xf32>
    %c0 = arith.constant 0 : index
    %c0_0 = arith.constant 0 : index
    %c0_1 = arith.constant 0 : index
    %1 = vector.load %arg2[%c0, %c0_0, %c0_1] : memref<1x72x16xbf16, #tpu.memory_space<vmem>>, vector<1x64x16xbf16>
    %2 = vector.shape_cast %1 : vector<1x64x16xbf16> to vector<64x16xbf16>
    %c0_2 = arith.constant 0 : index
    %c0_3 = arith.constant 0 : index
    %c0_4 = arith.constant 0 : index
    %c0_5 = arith.constant 0 : index
    %3 = vector.load %arg4[%c0_2, %c0_3, %c0_4, %c0_5] : memref<2x2x16x128xbf16, #tpu.memory_space<vmem>>, vector<1x1x16x128xbf16>
    %4 = vector.shape_cast %3 : vector<1x1x16x128xbf16> to vector<16x128xbf16>
    %cst_6 = arith.constant dense<0.000000e+00> : vector<64x128xf32>
    %5 = tpu.matmul %2, %4, %cst_6 {dimension_numbers = #tpu.dot_dimension_numbers<[1], [0], [0], [1], [0, 0, 1, 1], [], []>} : vector<64x16xbf16>, vector<16x128xbf16>, vector<64x128xf32> -> vector<64x128xf32>
    %6 = arith.addf %0, %5 : vector<64x128xf32>
    %c0_7 = arith.constant 0 : index
    %c0_8 = arith.constant 0 : index
    %c0_9 = arith.constant 0 : index
    %7 = vector.load %arg3[%c0_7, %c0_8, %c0_9] : memref<1x72x16xbf16, #tpu.memory_space<vmem>>, vector<1x64x16xbf16>
    %8 = vector.shape_cast %7 : vector<1x64x16xbf16> to vector<64x16xbf16>
    %c0_10 = arith.constant 0 : index
    %c1 = arith.constant 1 : index
    %c0_11 = arith.constant 0 : index
    %c0_12 = arith.constant 0 : index
    %9 = vector.load %arg4[%c0_10, %c1, %c0_11, %c0_12] : memref<2x2x16x128xbf16, #tpu.memory_space<vmem>>, vector<1x1x16x128xbf16>
    %10 = vector.shape_cast %9 : vector<1x1x16x128xbf16> to vector<16x128xbf16>
    %cst_13 = arith.constant dense<0.000000e+00> : vector<64x128xf32>
    %11 = tpu.matmul %8, %10, %cst_13 {dimension_numbers = #tpu.dot_dimension_numbers<[1], [0], [0], [1], [0, 0, 1, 1], [], []>} : vector<64x16xbf16>, vector<16x128xbf16>, vector<64x128xf32> -> vector<64x128xf32>
    %12 = arith.addf %6, %11 : vector<64x128xf32>
    %c0_14 = arith.constant 0 : index
    %c8 = arith.constant 8 : index
    %c0_15 = arith.constant 0 : index
    %13 = vector.load %arg2[%c0_14, %c8, %c0_15] : memref<1x72x16xbf16, #tpu.memory_space<vmem>>, vector<1x64x16xbf16>
    %14 = vector.shape_cast %13 : vector<1x64x16xbf16> to vector<64x16xbf16>
    %c1_16 = arith.constant 1 : index
    %c0_17 = arith.constant 0 : index
    %c0_18 = arith.constant 0 : index
    %c0_19 = arith.constant 0 : index
    %15 = vector.load %arg4[%c1_16, %c0_17, %c0_18, %c0_19] : memref<2x2x16x128xbf16, #tpu.memory_space<vmem>>, vector<1x1x16x128xbf16>
    %16 = vector.shape_cast %15 : vector<1x1x16x128xbf16> to vector<16x128xbf16>
    %cst_20 = arith.constant dense<0.000000e+00> : vector<64x128xf32>
    %17 = tpu.matmul %14, %16, %cst_20 {dimension_numbers = #tpu.dot_dimension_numbers<[1], [0], [0], [1], [0, 0, 1, 1], [], []>} : vector<64x16xbf16>, vector<16x128xbf16>, vector<64x128xf32> -> vector<64x128xf32>
    %18 = arith.addf %12, %17 : vector<64x128xf32>
    %c0_21 = arith.constant 0 : index
    %c8_22 = arith.constant 8 : index
    %c0_23 = arith.constant 0 : index
    %19 = vector.load %arg3[%c0_21, %c8_22, %c0_23] : memref<1x72x16xbf16, #tpu.memory_space<vmem>>, vector<1x64x16xbf16>
    %20 = vector.shape_cast %19 : vector<1x64x16xbf16> to vector<64x16xbf16>
    %c1_24 = arith.constant 1 : index
    %c1_25 = arith.constant 1 : index
    %c0_26 = arith.constant 0 : index
    %c0_27 = arith.constant 0 : index
    %21 = vector.load %arg4[%c1_24, %c1_25, %c0_26, %c0_27] : memref<2x2x16x128xbf16, #tpu.memory_space<vmem>>, vector<1x1x16x128xbf16>
    %22 = vector.shape_cast %21 : vector<1x1x16x128xbf16> to vector<16x128xbf16>
    %cst_28 = arith.constant dense<0.000000e+00> : vector<64x128xf32>
    %23 = tpu.matmul %20, %22, %cst_28 {dimension_numbers = #tpu.dot_dimension_numbers<[1], [0], [0], [1], [0, 0, 1, 1], [], []>} : vector<64x16xbf16>, vector<16x128xbf16>, vector<64x128xf32> -> vector<64x128xf32>
    %24 = arith.addf %18, %23 : vector<64x128xf32>
    %cst_29 = arith.constant dense<0.000000e+00> : vector<128xf32>
    %25 = vector.multi_reduction <add>, %24, %cst_29 [0] : vector<64x128xf32> to vector<128xf32>
    %26 = vector.shape_cast %25 : vector<128xf32> to vector<1x128xf32>
    %27 = arith.mulf %24, %24 : vector<64x128xf32>
    %cst_30 = arith.constant dense<0.000000e+00> : vector<128xf32>
    %28 = vector.multi_reduction <add>, %27, %cst_30 [0] : vector<64x128xf32> to vector<128xf32>
    %29 = vector.shape_cast %28 : vector<128xf32> to vector<1x128xf32>
    %cst_31 = arith.constant 1.562500e-02 : f32
    %30 = vector.broadcast %cst_31 : f32 to vector<1x128xf32>
    %31 = arith.mulf %26, %30 : vector<1x128xf32>
    %cst_32 = arith.constant 1.562500e-02 : f32
    %32 = vector.broadcast %cst_32 : f32 to vector<1x128xf32>
    %33 = arith.mulf %29, %32 : vector<1x128xf32>
    %34 = arith.mulf %31, %31 : vector<1x128xf32>
    %35 = arith.subf %33, %34 : vector<1x128xf32>
    %cst_33 = arith.constant 0.000000e+00 : f32
    %36 = vector.broadcast %cst_33 : f32 to vector<1x128xf32>
    %37 = arith.maximumf %35, %36 : vector<1x128xf32>
    %38 = vector.broadcast %31 : vector<1x128xf32> to vector<64x128xf32>
    %39 = arith.subf %24, %38 : vector<64x128xf32>
    %cst_34 = arith.constant 9.99999974E-6 : f32
    %40 = vector.broadcast %cst_34 : f32 to vector<1x128xf32>
    %41 = arith.addf %37, %40 : vector<1x128xf32>
    %42 = math.rsqrt %41 : vector<1x128xf32>
    %43 = vector.broadcast %42 : vector<1x128xf32> to vector<64x128xf32>
    %44 = arith.mulf %39, %43 : vector<64x128xf32>
    %cst_35 = arith.constant 0.000000e+00 : f32
    %45 = vector.broadcast %cst_35 : f32 to vector<64x128xf32>
    %46 = arith.cmpf oge, %44, %45 : vector<64x128xf32>
    %cst_36 = arith.constant 2.000000e-01 : f32
    %47 = vector.broadcast %cst_36 : f32 to vector<64x128xf32>
    %48 = arith.mulf %47, %44 : vector<64x128xf32>
    %49 = arith.select %46, %44, %48 : vector<64x128xi1>, vector<64x128xf32>
    %c0_37 = arith.constant 0 : index
    %c0_38 = arith.constant 0 : index
    %c0_39 = arith.constant 0 : index
    %50 = vector.load %arg5[%c0_37, %c0_38, %c0_39] : memref<1x64x128xf32, #tpu.memory_space<vmem>>, vector<1x64x128xf32>
    %51 = vector.shape_cast %50 : vector<1x64x128xf32> to vector<64x128xf32>
    %52 = vector.shape_cast %49 : vector<64x128xf32> to vector<1x64x128xf32>
    tpu.vector_store %arg5[%c0_37, %c0_38, %c0_39], %52 {strides = array<i32>} : memref<1x64x128xf32, #tpu.memory_space<vmem>>, vector<1x64x128xf32>,
    return
  }
  func.func @transform_0(%arg0: i32, %arg1: i32) -> (i32, i32, i32) {
    %c0_i32 = arith.constant 0 : i32
    %c0_i32_0 = arith.constant 0 : i32
    %c0_i32_1 = arith.constant 0 : i32
    return %arg0, %c0_i32, %c0_i32_0 : i32, i32, i32
  }
  func.func @transform_1(%arg0: i32, %arg1: i32) -> (i32, i32, i32) {
    %c0_i32 = arith.constant 0 : i32
    %c0_i32_0 = arith.constant 0 : i32
    %c0_i32_1 = arith.constant 0 : i32
    return %arg0, %c0_i32, %c0_i32_0 : i32, i32, i32
  }
  func.func @transform_2(%arg0: i32, %arg1: i32) -> (i32, i32, i32, i32) {
    %c0_i32 = arith.constant 0 : i32
    %c0_i32_0 = arith.constant 0 : i32
    %c0_i32_1 = arith.constant 0 : i32
    %c0_i32_2 = arith.constant 0 : i32
    return %c0_i32, %c0_i32_0, %c0_i32_1, %arg1 : i32, i32, i32, i32
  }
  func.func @transform_3(%arg0: i32, %arg1: i32) -> (i32, i32, i32) {
    %c0_i32 = arith.constant 0 : i32
    %c0_i32_0 = arith.constant 0 : i32
    return %arg0, %c0_i32, %arg1 : i32, i32, i32
  }
}

</mosaic_0001>

<bundles_post_ra>
// kernel: tpu_custom_call.1
= control target key start
LH: loop header
LB: loop body
LE: loop exit
PB: predicated region body
PF: predicated region fallthrough
CT: control target
= control target key end

     0   :  { %8 = vsyncpa [#allocation3], 0  ;;  %s1421_s0 = inlined_call_operand.vmem [shape: bf16[2,72,16], index: 0, kind: input, shape index: {}]   ;;  %s1422_s1 = inlined_call_operand.vmem [shape: bf16[2,72,16], index: 1, kind: input, shape index: {}]   ;;  %s1423_s2 = inlined_call_operand.vmem [shape: bf16[2,2,16,128], index: 2, kind: input, shape index: {}]   ;;  %s1424_s3 = inlined_call_operand.hbm [shape: f32[2,64,128], index: 3, kind: output, shape index: {}]  }
   0x1   :  { %10 = vsyncpa [#allocation3 + $0x1], 0  ;;  %s1220_s12 = smov 0   ;;  %s1222_s13 = smov 0  }
   0x2   :  { %s1224_s14 = smov 0   ;;  %s1226_s15 = smov 0  }
   0x3   :  { %s1228_s16 = smov 0   ;;  %s1230_s17 = smov 0  }
   0x4 LB: > { %s896_s18 = sadd.s32 4294967295, %s1195_s17   ;;  %s897_s19 = sadd.s32 4294967294, %s1195_s17   ;;  %s1195_s17 = sphi %s1230_s17, %s16_s17   ;;  %s1191_s16 = sphi %s1228_s16, %s1431_s16   ;;  %s1187_s15 = sphi %s1226_s15, %s1430_s15   ;;  %s1183_s14 = sphi %s1224_s14, %s1429_s14   ;;  %s1179_s13 = sphi %s1222_s13, %s1428_s13   ;;  %s1175_s12 = sphi %s1220_s12, %s1427_s12  }
   0x5   : > { %s28_s20 = sadd.s32 1, %s1191_s16  ;;  %s115_s21 = sadd.s32 1, %s1183_s14 }
   0x6   : > { %p30_p0 = scmp.ge.s32.totalorder %s28_s20, 2  ;;  %p125_p1 = scmp.ne.s32.totalorder %s1183_s14, %s1179_s13 }
   0x7   : > { %p126_p2 = scmp.eq.s32.totalorder %s896_s18, 1  ;;  %p131_p3 = scmp.ne.s32.totalorder %s1179_s13, %s1175_s12 }
   0x8   : > { %s1433_s20 = smov (%p30_p0, %s28_s20), 0  ;;  %p132_p5 = scmp.eq.s32.totalorder %s897_s19, 1 }
   0x9   : > { %p1260_p4 = por %p126_p2, %p125_p1  ;;  %s110_s23 = ssub.s32 %s1191_s16, %s1433_s20 }
   0xa   : > { %p901_p6 = scmp.ge.s32.totalorder %s1195_s17, 1  ;;  %p113_p7 = scmp.eq.s32.totalorder %s110_s23, 0 }
   0xb   : > { %p1267_p8 = por %p132_p5, %p131_p3  ;;  %p173_p9 = scmp.lt.s32.totalorder %s1195_s17, 3 }
   0xc   : > { %s1273_s25 = scalar_select %p113_p7, %s1183_s14, %s115_s21  }
   0xd   : > { %p174_p10 = pnand %p901_p6, %p173_p9 }
   0xe   : > { %v1095_v0 = vld [vmem:[%s1423_s2 + $0x8] sm:$0xff] (!%p174_p10)   ;;  %p206_p11 = scmp.lt.s32.totalorder (!%p174_p10), %s1187_s15, 1  ;;  %v1096_v1 = vld [vmem:[%s1423_s2 + $0x10] sm:$0xff] (!%p174_p10)   ;;  %v1098_v2 = vld [vmem:[%s1423_s2] sm:$0xff] (!%p174_p10)   ;;  %vm268_vm0 = vcmask (!%p174_p10), 130048   ;;  %s203_s23 = sand.u32 (!%p174_p10), 1, %s1179_s13  }
   0xf   : > { %177 = sbr.rel (%p174_p10) target bundleno = 335 (0x14f), region = 32  ;;  %973 = vmatprep.subr.bf16.mxu1 (!%p174_p10), %v1095_v0  ;;  %993 = vmatprep.subr.bf16.mxu0 (!%p174_p10), %v1096_v1  ;;  %v1100_v3 = vld [vmem:[%s1423_s2 + $0x18] sm:$0xff] (!%p174_p10)   ;;  %s902_s26 = sshll.u32 (!%p174_p10), %s203_s23, 6 }
  0x10   : > { %974 = vmatpush3.bf16.msra.mxu1 (!%p174_p10), %v1095_v0  ;;  %994 = vmatpush3.bf16.msra.mxu0 (!%p174_p10), %v1096_v1  ;;  %s952_s27 = sshll.u32 (!%p174_p10), %s1187_s15, 10  ;;  %s205_s28 = scalar_lea.vmem (!%p174_p10), [#allocation2], %s902_s26 }
  0x11   : > { %983 = vmatprep.subr.bf16.mxu1 (!%p174_p10), %v1098_v2  ;;  %1003 = vmatprep.subr.bf16.mxu0 (!%p174_p10), %v1100_v3  ;;  %s797_s29 = sshll.u32 (!%p174_p10), %s205_s28, 4  ;;  %s1375_s5 = scalar_lea.sflag (!%p174_p10), [#allocation3], %s203_s23  ;;  %s1366_s29 = int_to_ptr.vmem [resolvable:$true] %s797_s29 }
  0x12   : > { %s1117_s6 = scalar_lea.vmem (!%p174_p10), %s1366_s29, 1024  ;;  %s1197_s7 = smov (!%p174_p10), [#allocation2]  }
  0x13   : > { %p1118_p12 = scmp.ne.s32.totalorder (!%p174_p10), %s1366_s29, %s1117_s6 }
  0x15   : > { %p1119_p13 = pnand (!%p174_p10), %p1118_p12, %p1260_p4 }
  0x16   : > { %s207_s30 = scalar_select %p206_p11, %s1187_s15, 1 }
  0x17   : > { %s1364_s15 = scalar_lea.hbm %s1424_s3, %s952_s27  ;;  %p1120_p0 = pneg %p1119_p13 }
  0x18   : > { %s1037_s8 = smul.u32 36, %s207_s30 }
  0x1a   : > { %s1292_s11 = scalar_lea.vmem %s1422_s1, %s1037_s8  ;;  %s1297_s21 = scalar_lea.vmem %s1421_s0, %s1037_s8 }
  0x1b   : > { %v1097_v4 = vld [vmem:[%s1292_s11] sm:$0xff]   ;;  %v1101_v6 = vld [vmem:[%s1292_s11 + $0x8] sm:$0xff]   ;;  %v1103_v8 = vld [vmem:[%s1292_s11 + $0x10] sm:$0xff]   ;;  %s1121_s8 = sshll.u32 %s1197_s7, 4  ;;  %s1122_s8 = int_to_ptr.vmem [resolvable:$false] %s1121_s8 }
  0x1c   : > { %v1099_v5 = vld [vmem:[%s1297_s21 + $0x4] sm:$0xff]   ;;  %975 = vmatprep.mubr.msk.bf16.mxu1 %vm268_vm0, %v1097_v4  ;;  %v1102_v7 = vld [vmem:[%s1297_s21 + $0xc] sm:$0xff]   ;;  %v1104_v9 = vld [vmem:[%s1297_s21 + $0x14] sm:$0xff]   ;;  %s1123_s9 = scalar_lea.vmem %s1122_s8, 2048  ;;  %p1124_p1 = scmp.lt.s32.totalorder %s1366_s29, %s1122_s8 }
  0x1d   : > { %995 = vmatprep.mubr.msk.bf16.mxu0 %vm268_vm0, %v1099_v5  ;;  %976 = vmatmul.mubr.msk.bf16.vlgmr.msra.gmra.mrb[0].mxu1 %vm268_vm0, %v1101_v6  ;;  %v1105_v10 = vld [vmem:[%s1292_s11 + $0x18] sm:$0xff]   ;;  %v1107_v12 = vld [vmem:[%s1297_s21] sm:$0xff]   ;;  %v1109_v14 = vld [vmem:[%s1297_s21 + $0x8] sm:$0xff]   ;;  %p1125_p2 = scmp.lt.s32.totalorder %s1123_s9, %s1117_s6 }
  0x1e   : > { %984 = vmatpush3.bf16.msra.mxu1 %v1098_v2  ;;  %996 = vmatmul.mubr.msk.bf16.vlgmr.msra.gmra.mrb[0].mxu0 %vm268_vm0, %v1102_v7  ;;  %v1106_v11 = vld [vmem:[%s1297_s21 + $0x1c] sm:$0xff]   ;;  %v1108_v13 = vld [vmem:[%s1292_s11 + $0x4] sm:$0xff]   ;;  %v1110_v15 = vld [vmem:[%s1292_s11 + $0xc] sm:$0xff]  }
  0x1f   : > { %1004 = vmatpush3.bf16.msra.mxu0 %v1100_v3  ;;  %979 = vmatprep.mubr.msk.bf16.mxu1 %vm268_vm0, %v1103_v8  ;;  %v1111_v16 = vld [vmem:[%s1297_s21 + $0x10] sm:$0xff]   ;;  %v1113_v18 = vld [vmem:[%s1297_s21 + $0x18] sm:$0xff]   ;;  %p1126_p3 = por %p1125_p2, %p1124_p1 }
  0x20   : > { %999 = vmatprep.mubr.msk.bf16.mxu0 %vm268_vm0, %v1104_v9  ;;  %v1112_v17 = vld [vmem:[%s1292_s11 + $0x14] sm:$0xff]   ;;  %v1114_v19 = vld [vmem:[%s1292_s11 + $0x1c] sm:$0xff]  }
  0x21   : > { %p1127_p5 = pnand %p1126_p3, %p1120_p0 }
  0x25   : > { %980 = vmatmul.mubr.msk.bf16.gmra.mrb[4].mxu1 %vm268_vm0, %v1105_v10 }
  0x26   : > { %1000 = vmatmul.mubr.msk.bf16.gmra.mrb[4].mxu0 %vm268_vm0, %v1106_v11  ;;  %985 = vmatprep.mubr.msk.bf16.mxu1 %vm268_vm0, %v1107_v12 }
  0x27   : > { %1005 = vmatprep.mubr.msk.bf16.mxu0 %vm268_vm0, %v1108_v13 }
  0x2d   : > { %986 = vmatmul.mubr.msk.bf16.vlgmr.msra.gmra.mrb[0].mxu1 %vm268_vm0, %v1109_v14 }
  0x2e   : > { %1006 = vmatmul.mubr.msk.bf16.vlgmr.msra.gmra.mrb[0].mxu0 %vm268_vm0, %v1110_v15  ;;  %989 = vmatprep.mubr.msk.bf16.mxu1 %vm268_vm0, %v1111_v16 }
  0x2f   : > { %1009 = vmatprep.mubr.msk.bf16.mxu0 %vm268_vm0, %v1112_v17 }
  0x35   : > { %990 = vmatmul.mubr.msk.bf16.gmra.mrb[4].mxu1 %vm268_vm0, %v1113_v18 }
  0x36   : > { %1010 = vmatmul.mubr.msk.bf16.gmra.mrb[4].mxu0 %vm268_vm0, %v1114_v19 }
 0x100   : > { %v987_v20 = vpop.f32.mrb[0].mxu1 }
 0x101   : > { %v1007_v21 = vpop.f32.mrb[0].mxu0  ;;  %v418_v22 = vpop.f32.mrb[1].mxu1 }
 0x102   : > { %v1331_v23 = vadd.f32 %v1007_v21, %v987_v20  ;;  %v654_v24 = vpop.f32.mrb[1].mxu0  ;;  %v988_v25 = vpop.f32.mrb[2].mxu1 }
 0x103   : > { %v1333_v26 = vadd.f32 %v654_v24, %v418_v22  ;;  %v1008_v27 = vpop.f32.mrb[2].mxu0  ;;  %v421_v28 = vpop.f32.mrb[3].mxu1 }
 0x104   : > { %v1335_v29 = vadd.f32 %v1008_v27, %v988_v25  ;;  %v657_v30 = vpop.f32.mrb[3].mxu0  ;;  %v708_v36 = vmul.f32 %v1331_v23, %v1331_v23 }
 0x105   : > { %v1337_v31 = vadd.f32 %v657_v30, %v421_v28  ;;  %v706_v32 = vmul.f32 %v1333_v26, %v1333_v26 }
 0x106   : > { %v709_v44 = vmul.f32 %v1335_v29, %v1335_v29 }
 0x107   : > { %v693_v33 = vadd.f32 %v1337_v31, %v1333_v26  ;;  %v707_v34 = vmul.f32 %v1337_v31, %v1337_v31 }
 0x108   : > { %v991_v35 = vpop.f32.mrb[4].mxu1 }
 0x109   : > { %v694_v37 = vadd.f32 %v1331_v23, %v693_v33  ;;  %v714_v38 = vadd.f32 %v707_v34, %v706_v32  ;;  %v1011_v39 = vpop.f32.mrb[4].mxu0  ;;  %v434_v40 = vpop.f32.mrb[5].mxu1 }
 0x10a   : > { %v1017_v41 = vadd.f32 %v1011_v39, %v991_v35  ;;  %v670_v42 = vpop.f32.mrb[5].mxu0  ;;  %v992_v43 = vpop.f32.mrb[6].mxu1 }
 0x10b   : > { %v715_v45 = vadd.f32 %v714_v38, %v708_v36  ;;  %v1018_v46 = vadd.f32 %v670_v42, %v434_v40  ;;  %v695_v47 = vadd.f32 %v1335_v29, %v694_v37  ;;  %v1012_v48 = vpop.f32.mrb[6].mxu0  ;;  %v437_v49 = vpop.f32.mrb[7].mxu1 }
 0x10c   : > { %v1019_v50 = vadd.f32 %v1012_v48, %v992_v43  ;;  %v673_v51 = vpop.f32.mrb[7].mxu0  ;;  %v712_v59 = vmul.f32 %v1017_v41, %v1017_v41 }
 0x10d   : > { %v696_v52 = vadd.f32 %v1018_v46, %v695_v47  ;;  %v710_v53 = vmul.f32 %v1018_v46, %v1018_v46  ;;  %v716_v54 = vadd.f32 %v715_v45, %v709_v44  ;;  %v1020_v55 = vadd.f32 %v673_v51, %v437_v49 }
 0x10e   : > { %v713_v62 = vmul.f32 %v1019_v50, %v1019_v50 }
 0x10f   : > { %v717_v56 = vadd.f32 %v716_v54, %v710_v53  ;;  %v697_v57 = vadd.f32 %v1020_v55, %v696_v52  ;;  %v711_v58 = vmul.f32 %v1020_v55, %v1020_v55 }
 0x111   : > { %v698_v60 = vadd.f32 %v1017_v41, %v697_v57  ;;  %v718_v61 = vadd.f32 %v717_v56, %v711_v58 }
 0x113   : > { %v699_v63 = vadd.f32 %v1019_v50, %v698_v60  ;;  %v719_v0 = vadd.f32 %v718_v61, %v712_v59 }
 0x115   : > { %v700_v1 = vrot.slane %v699_v63, 4  ;;  %v720_v2 = vadd.f32 %v719_v0, %v713_v62 }
 0x117   : > { %v701_v3 = vadd.f32 %v700_v1, %v699_v63  ;;  %v721_v4 = vrot.slane %v720_v2, 4 }
 0x119   : > { %v702_v5 = vrot.slane %v701_v3, 2  ;;  %v722_v6 = vadd.f32 %v721_v4, %v720_v2 }
 0x11b   : > { %v703_v7 = vadd.f32 %v702_v5, %v701_v3  ;;  %v723_v8 = vrot.slane %v722_v6, 2 }
 0x11d   : > { %v704_v9 = vrot.slane %v703_v7, 1  ;;  %v724_v10 = vadd.f32 %v723_v8, %v722_v6 }
 0x11f   : > { %v705_v11 = vadd.f32 %v704_v9, %v703_v7  ;;  %v725_v12 = vrot.slane %v724_v10, 1 }
 0x121   : > { %v726_v13 = vadd.f32 %v725_v12, %v724_v10  ;;  %v727_v14 = vmul.f32 0.015625, %v705_v11 }
 0x123   : > { %v728_v15 = vmul.f32 0.015625, %v726_v13  ;;  %v729_v16 = vmul.f32 %v727_v14, %v727_v14  ;;  %v737_v17 = vsub.f32 %v1020_v55, %v727_v14  ;;  %v732_v18 = vsub.f32 %v1333_v26, %v727_v14 }
 0x124   : > { %v733_v19 = vsub.f32 %v1337_v31, %v727_v14  ;;  %v734_v20 = vsub.f32 %v1331_v23, %v727_v14  ;;  %v735_v21 = vsub.f32 %v1335_v29, %v727_v14  ;;  %v736_v22 = vsub.f32 %v1018_v46, %v727_v14 }
 0x125   : > { %v730_v24 = vsub.f32 %v728_v15, %v729_v16  ;;  %v738_v25 = vsub.f32 %v1017_v41, %v727_v14  ;;  %v739_v27 = vsub.f32 %v1019_v50, %v727_v14 }
 0x127   : > { %v731_v28 = vmax.f32 %v730_v24, 0.0 }
 0x129   : > { %v740_v30 = vadd.f32 1e-05, %v731_v28 }
 0x12b   : > { %1115 = vrsqrt.f32 %v740_v30 }
 0x135   : > { %v1116_v32 = vpop.eup %1115 }
 0x136   : > { %v747_v33 = vmul.f32 %v1116_v32, %v737_v17  ;;  %v742_v26 = vmul.f32 %v1116_v32, %v732_v18  ;;  %v743_v34 = vmul.f32 %v1116_v32, %v733_v19  ;;  %v744_v31 = vmul.f32 %v1116_v32, %v734_v20 }
 0x137   : > { %v745_v35 = vmul.f32 %v1116_v32, %v735_v21  ;;  %v746_v23 = vmul.f32 %v1116_v32, %v736_v22  ;;  %v748_v36 = vmul.f32 %v1116_v32, %v738_v25  ;;  %v749_v29 = vmul.f32 %v1116_v32, %v739_v27 }
 0x138   : > { %vm755_vm1 = vcmp.ge.f32.partialorder %v747_v33, 0.0  ;;  %v763_v37 = vmul.f32 0.2, %v747_v33  ;;  %vm750_vm2 = vcmp.ge.f32.partialorder %v742_v26, 0.0  ;;  %vm751_vm3 = vcmp.ge.f32.partialorder %v743_v34, 0.0 }
 0x139   : > { %vm752_vm4 = vcmp.ge.f32.partialorder %v744_v31, 0.0  ;;  %vm753_vm5 = vcmp.ge.f32.partialorder %v745_v35, 0.0  ;;  %vm754_vm6 = vcmp.ge.f32.partialorder %v746_v23, 0.0  ;;  %vm756_vm7 = vcmp.ge.f32.partialorder %v748_v36, 0.0 }
 0x13a   : > { %v771_v38 = vsel %vm755_vm1, %v747_v33, %v763_v37  ;;  %vm757_vm8 = vcmp.ge.f32.partialorder %v749_v29, 0.0  ;;  %v758_v39 = vmul.f32 0.2, %v742_v26  ;;  %v759_v40 = vmul.f32 0.2, %v743_v34 }
 0x13b   : > { %779 = vst [vmem:[%s205_s28 + $0x28] sm:$0xff] %v771_v38  ;;  %v760_v41 = vmul.f32 0.2, %v744_v31  ;;  %v761_v42 = vmul.f32 0.2, %v745_v35 }
 0x13c   : > { %v762_v43 = vmul.f32 0.2, %v746_v23  ;;  %v764_v44 = vmul.f32 0.2, %v748_v36  ;;  %v765_v45 = vmul.f32 0.2, %v749_v29  ;;  %v766_v46 = vsel %vm750_vm2, %v742_v26, %v758_v39 }
 0x13d   : > { %v767_v47 = vsel %vm751_vm3, %v743_v34, %v759_v40  ;;  %v768_v48 = vsel %vm752_vm4, %v744_v31, %v760_v41  ;;  %v769_v49 = vsel %vm753_vm5, %v745_v35, %v761_v42  ;;  %774 = vst [vmem:[%s205_s28] sm:$0xff] %v766_v46 }
 0x13e   : > { %v770_v50 = vsel %vm754_vm6, %v746_v23, %v762_v43  ;;  %775 = vst [vmem:[%s205_s28 + $0x8] sm:$0xff] %v767_v47  ;;  %v772_v51 = vsel %vm756_vm7, %v748_v36, %v764_v44  ;;  %v773_v52 = vsel %vm757_vm8, %v749_v29, %v765_v45  ;;  %776 = vst [vmem:[%s205_s28 + $0x10] sm:$0xff] %v768_v48 }
 0x13f   : > { %777 = vst [vmem:[%s205_s28 + $0x18] sm:$0xff] %v769_v49  ;;  %778 = vst [vmem:[%s205_s28 + $0x20] sm:$0xff] %v770_v50 }
 0x140   : > { %780 = vst [vmem:[%s205_s28 + $0x30] sm:$0xff] %v772_v51  ;;  %781 = vst [vmem:[%s205_s28 + $0x38] sm:$0xff] %v773_v52 }
 0x141   : > { %1130 = shalt.err (!%p1127_p5)
}
 0x142   : > { %s1131_s10 = scalar_lea.hbm %s1364_s15, 1024  ;;  %s1135_s19 = scalar_lea.hbm %s1424_s3, 2048 }
 0x143   : > { %p1132_p6 = scmp.ne.s32.totalorder %s1364_s15, %s1131_s10  ;;  %p1136_p10 = scmp.lt.u32.totalorder %s1364_s15, %s1424_s3 }
 0x144   : > { %p1137_p11 = scmp.lt.u32.totalorder %s1135_s19, %s1131_s10  ;;  %p1139_p13 = scmp.lt.u32.totalorder %s1131_s10, %s1364_s15 }
 0x145   : > { %p1133_p7 = pnand %p1132_p6, %p1260_p4 }
 0x146   : > { %p1138_p12 = por %p1137_p11, %p1136_p10 }
 0x147   : > { %p1134_p9 = pneg %p1133_p7 }
 0x148   : > { %p1140_p0 = por %p1139_p13, %p1138_p12 }
 0x14a   : > { %p1141_p1 = pnand %p1140_p0, %p1134_p9 }
 0x14c   : > { %1144 = shalt.err (!%p1141_p1)
}
 0x14d   : > { %s1198_s26 = smov 128   ;;  %s1199_s27 = smov 8  }
 0x14e   : > { %1038 = dma.vmem_to_hbm [thread:$0]  (%p1260_p4), %s1366_s29, 1024, %s1364_s15, %s1375_s5, %s1198_s26, %s1198_s26, %s1199_s27  }
 0x14f PF: > { %p1044_p2 = scmp.ge.s32.totalorder %s1195_s17, 2  ;;  %s812_s28 = sand.u32 1, %s1175_s12  }
 0x150   : > { %s813_s30 = scalar_lea.sflag [#allocation3], %s812_s28 }
 0x151   : > { %p1041_p3 = pnand %p1044_p2, %p1267_p8 }
 0x153   : > { %1170 = dma.done.wait (!%p1041_p3), %s813_s30, 1024  }
 0x154   : > { %1172 = vsyncadd (!%p1041_p3), %s813_s30, 4294966272  ;;  %s16_s17 = sadd.s32 1, %s1195_s17   ;;  %s1427_s12 = smov %s1179_s13 }
 0x155   : > { %p13_p5 = scmp.ge.s32.totalorder %s16_s17, 4   ;;  %s1428_s13 = smov %s1183_s14 }
 0x156   : > { %s1429_s14 = smov %s1273_s25  ;;  %s1430_s15 = smov %s1191_s16 }
 0x157   : > { %s1431_s16 = smov %s1433_s20  ;;  %15 = sbr.rel (!%p13_p5) target bundleno = 4 (0x4), region = 76 }
 0x15e   :  { %818 = vsyncpa [#allocation3], 1 }
 0x15f   :  { %820 = vsyncpa [#allocation3 + $0x1], 1 }

</bundles_post_ra>
